<compile_context>
chip_gen: v5e
topology: v5e:2x2
jax: 0.10.0
libtpu: 0.0.40
codegen_flags: <defaults>
</compile_context>

<pallas_src>
import functools

import numpy as np
import jax
import jax.numpy as jnp
from jax.experimental import pallas as pl
from jax.experimental.pallas import tpu as pltpu

IN_DIM = 16        # in_dim   (raw node feature dim)
HID_DIM = 32       # hid_dim  (per-head hidden dim of conv1)
OUT_DIM = 32       # out_dim  (output dim of conv2)
HEADS = 4
BN_EPS = 1e-5
NEG_SLOPE = 0.2    # GATConv leaky_relu default
NEG_INF = -1e30


def _vmem():
    return pl.BlockSpec(memory_space=pltpu.MemorySpace.VMEM)


# ---------------------------- kernel ----------------------------

def _gat_heads(h, adj_bias, w, asd_w, heads, f_out):
    """Dense multi-head GAT aggregation, fully in VMEM/vregs.

    h:        [N, Fin]  f32 node features
    adj_bias: [N, N]    f32, 0 where edge j -> i exists (self-loops incl.),
                        -1e30 elsewhere
    w:        [Fin, heads*f_out] f32 weight
    asd_w:    [Fin, 2*heads] f32, cols 0..h-1 = W_head @ att_src,
                                  cols h..2h-1 = W_head @ att_dst
    returns: list of per-head aggregated outputs [N, f_out] (bias not added).
    """
    # Big matmul on the MXU with bf16 operands, f32 accumulation.
    xw = jnp.dot(h.astype(jnp.bfloat16), w.astype(jnp.bfloat16),
                 preferred_element_type=jnp.float32)                 # [N, heads*f_out]
    # All per-head attention coefficients in one tiny f32 MXU matmul
    # (no per-head XLU reductions); logits stay f32 for accuracy.
    asd = jnp.dot(h, asd_w, preferred_element_type=jnp.float32)      # [N, 2*heads]

    outs = []
    for hd in range(heads):
        xh = xw[:, hd * f_out:(hd + 1) * f_out].astype(jnp.bfloat16)   # [N, f_out]
        a_src_row = jnp.transpose(asd[:, hd:hd + 1])                   # [1, N] (source j)
        a_dst_col = asd[:, heads + hd:heads + hd + 1]                  # [N, 1] (target i)
        logit = a_dst_col + a_src_row                                  # [N, N]
        leaky = jnp.maximum(logit, NEG_SLOPE * logit)                  # LeakyReLU(0.2) as one max
        masked = leaky + adj_bias                                      # mask non-edges (add, not select)
        m = jnp.max(masked, axis=1, keepdims=True)
        p = jnp.exp(masked - m)
        attn = p * pl.reciprocal(jnp.sum(p, axis=1, keepdims=True), approx=True)
        outs.append(jnp.dot(attn.astype(jnp.bfloat16), xh,
                            preferred_element_type=jnp.float32))       # [N, f_out]
    return outs


def _phylogat_kernel(x_ref, adj_ref,
                     w1_ref, asd1_ref,
                     bn_scale_ref, bn_shift_ref,
                     w2_ref, asd2_ref, b2_ref,
                     out_ref, *, heads, hid, out_dim):
    # Additive mask built once, shared by both convs.
    adj_bias = jnp.where(adj_ref[...] > 0.0, 0.0, NEG_INF)            # [N, N] f32

    # ---- conv1: GATConv(in_dim, hid_dim, heads=4, concat=True) ----
    heads1 = _gat_heads(x_ref[...], adj_bias, w1_ref[...], asd1_ref[...], heads, hid)
    x1 = jnp.concatenate(heads1, axis=1)                              # [N, heads*hid], stays in vregs

    # ---- BatchNorm1d (eval, running stats + conv1 bias folded to scale/shift) + ELU ----
    y = x1 * bn_scale_ref[...] + bn_shift_ref[...]
    h1 = jnp.where(y > 0, y, jnp.exp(jnp.minimum(y, 0.0)) - 1.0)
    # dropout: eval-mode identity

    # ---- conv2: GATConv(hid*heads, out_dim, heads=1, concat=False) ----
    (o2,) = _gat_heads(h1, adj_bias, w2_ref[...], asd2_ref[...], 1, out_dim)
    # TODO(synk): attention coefficients (self._last_attention) are computed in-kernel
    # but not written back to HBM; only x2 (the module's return value) is materialized.
    out_ref[...] = o2 + b2_ref[...]


# ---------------------------- wrapper ----------------------------

@jax.jit
def phylogat_forward(params, x, adj):
    heads, hid, out_dim = HEADS, HID_DIM, OUT_DIM

    # One-time parameter preprocessing (trace time): fold per-head attention
    # vectors into a [Fin, 2*heads] matmul operand, fold BN running stats and
    # the conv1 bias into a single scale/shift pair.
    fin1 = params["w1"].shape[0]
    w1h = params["w1"].reshape(fin1, heads, hid)
    asd1 = jnp.concatenate(
        [jnp.einsum("fhd,hd->fh", w1h, params["att_src1"]),
         jnp.einsum("fhd,hd->fh", w1h, params["att_dst1"])], axis=1)   # [Fin1, 2*heads]

    fin2 = params["w2"].shape[0]
    w2h = params["w2"].reshape(fin2, 1, out_dim)
    asd2 = jnp.concatenate(
        [jnp.einsum("fhd,hd->fh", w2h, params["att_src2"]),
         jnp.einsum("fhd,hd->fh", w2h, params["att_dst2"])], axis=1)   # [Fin2, 2]

    bn_scale = params["bn_g"] * jax.lax.rsqrt(params["bn_v"] + BN_EPS)
    bn_shift = params["bn_b"] - params["bn_m"] * bn_scale
    bn_shift = bn_shift + params["bias1"] * bn_scale                   # fold conv1 bias

    n = x.shape[0]
    kern = functools.partial(_phylogat_kernel, heads=heads, hid=hid, out_dim=out_dim)
    return pl.pallas_call(
        kern,
        out_shape=jax.ShapeDtypeStruct((n, out_dim), jnp.float32),
        in_specs=[_vmem()] * 9,
        out_specs=_vmem(),
    )(x, adj, params["w1"], asd1, bn_scale, bn_shift,
      params["w2"], asd2, params["bias2"])


# ---------------------------- pure-JAX reference (f32, PyG semantics) ----------------------------

def reference_forward(params, x, adj):
    def gat(h, w, a_src, a_dst, bias, heads, f_out, concat):
        xw = h @ w
        outs = []
        for hd in range(heads):
            xh = xw[:, hd * f_out:(hd + 1) * f_out]
            s = (xh * a_src[hd]).sum(1)
            d = (xh * a_dst[hd]).sum(1)
            logit = d[:, None] + s[None, :]
            logit = jnp.where(logit > 0, logit, NEG_SLOPE * logit)
            logit = jnp.where(adj > 0, logit, NEG_INF)
            attn = jax.nn.softmax(logit, axis=1)
            outs.append(attn @ xh)
        if concat:
            return jnp.concatenate(outs, axis=1) + bias
        return sum(outs) / heads + bias

    x1 = gat(x, params["w1"], params["att_src1"], params["att_dst1"], params["bias1"],
             HEADS, HID_DIM, True)
    y = (x1 - params["bn_m"]) * jax.lax.rsqrt(params["bn_v"] + BN_EPS) * params["bn_g"] + params["bn_b"]
    x1 = jnp.where(y > 0, y, jnp.exp(jnp.minimum(y, 0.0)) - 1.0)
    x2 = gat(x1, params["w2"], params["att_src2"], params["att_dst2"], params["bias2"],
             1, OUT_DIM, False)
    return x2


# ---------------------------- setup ----------------------------

def edge_index_to_dense_adj(edge_index, num_nodes):
    # GATConv message passing: target i aggregates over sources j; add_self_loops=True default.
    adj = np.zeros((num_nodes, num_nodes), np.float32)
    src, dst = edge_index
    adj[dst, src] = 1.0
    adj[np.arange(num_nodes), np.arange(num_nodes)] = 1.0   # self loops
    assert adj.sum(axis=1).min() >= 1.0, "every target node needs >=1 incoming edge"
    return adj


def init_params(key):
    ks = jax.random.split(key, 12)
    fin, hid, heads, out = IN_DIM, HID_DIM, HEADS, OUT_DIM

    def rnd(k, shape, scale):
        return (scale * jax.random.normal(k, shape)).astype(jnp.float32)

    return {
        "w1": rnd(ks[0], (fin, heads * hid), 1.0 / np.sqrt(fin)),
        "att_src1": rnd(ks[1], (heads, hid), 1.0 / np.sqrt(hid)),
        "att_dst1": rnd(ks[2], (heads, hid), 1.0 / np.sqrt(hid)),
        "bias1": rnd(ks[3], (1, heads * hid), 0.1),
        "bn_g": (1.0 + rnd(ks[4], (1, heads * hid), 0.1)).astype(jnp.float32),
        "bn_b": rnd(ks[5], (1, heads * hid), 0.1),
        "bn_m": rnd(ks[6], (1, heads * hid), 0.1),
        "bn_v": (0.5 + jax.random.uniform(ks[7], (1, heads * hid))).astype(jnp.float32),
        "w2": rnd(ks[8], (heads * hid, out), 1.0 / np.sqrt(heads * hid)),
        "att_src2": rnd(ks[9], (1, out), 1.0 / np.sqrt(out)),
        "att_dst2": rnd(ks[10], (1, out), 1.0 / np.sqrt(out)),
        "bias2": rnd(ks[11], (1, out), 0.1),
    }


if __name__ == "__main__":
    n_nodes = 32
    key = jax.random.PRNGKey(0)
    kp, kx = jax.random.split(key)
    params = init_params(kp)

    # Chain graph, edges in both directions; PyG edge_index convention [2, E] = (src, dst).
    src = list(range(n_nodes - 1)) + list(range(1, n_nodes))
    dst = list(range(1, n_nodes)) + list(range(n_nodes - 1))
    edge_index = np.asarray([src, dst], dtype=np.int32)
    adj = jnp.asarray(edge_index_to_dense_adj(edge_index, n_nodes))

    x = jax.random.normal(kx, (n_nodes, IN_DIM), dtype=jnp.float32)
    # edge_weight is accepted by PhyloGAT.forward but never used by GATConv there.

    out = phylogat_forward(params, x, adj)
    out = jax.block_until_ready(out)

    ref = reference_forward(params, x, adj)
    # Note: bf16 MXU operands + approx reciprocal loosen accuracy slightly; 2e-2 covers it.
    np.testing.assert_allclose(np.asarray(out), np.asarray(ref), rtol=2e-2, atol=2e-2)
    print("KERNEL_OK")
</pallas_src>

<mosaic_0001>
module attributes {stable_mosaic.version = 11 : i64} {
  func.func @_phylogat_kernel(%arg0: memref<32x16xf32, #tpu.memory_space<vmem>>, %arg1: memref<32x32xf32, #tpu.memory_space<vmem>>, %arg2: memref<16x128xf32, #tpu.memory_space<vmem>>, %arg3: memref<16x8xf32, #tpu.memory_space<vmem>>, %arg4: memref<1x128xf32, #tpu.memory_space<vmem>>, %arg5: memref<1x128xf32, #tpu.memory_space<vmem>>, %arg6: memref<128x32xf32, #tpu.memory_space<vmem>>, %arg7: memref<128x2xf32, #tpu.memory_space<vmem>>, %arg8: memref<1x32xf32, #tpu.memory_space<vmem>>, %arg9: memref<32x32xf32, #tpu.memory_space<vmem>>) attributes {dimension_semantics = [], scalar_prefetch = 0 : i64, scratch_operands = 0 : i64, tpu.core_type = #tpu.core_type<tc>} {
    %c0 = arith.constant 0 : index
    %c0_0 = arith.constant 0 : index
    %0 = vector.load %arg1[%c0, %c0_0] : memref<32x32xf32, #tpu.memory_space<vmem>>, vector<32x32xf32>
    %cst = arith.constant 0.000000e+00 : f32
    %1 = vector.broadcast %cst : f32 to vector<32x32xf32>
    %2 = arith.cmpf ogt, %0, %1 : vector<32x32xf32>
    %cst_1 = arith.constant 0.000000e+00 : f32
    %cst_2 = arith.constant -1.000000e+30 : f32
    %3 = vector.broadcast %cst_1 : f32 to vector<32x32xf32>
    %4 = vector.broadcast %cst_2 : f32 to vector<32x32xf32>
    %5 = arith.select %2, %3, %4 : vector<32x32xi1>, vector<32x32xf32>
    %c0_3 = arith.constant 0 : index
    %c0_4 = arith.constant 0 : index
    %6 = vector.load %arg0[%c0_3, %c0_4] : memref<32x16xf32, #tpu.memory_space<vmem>>, vector<32x16xf32>
    %c0_5 = arith.constant 0 : index
    %c0_6 = arith.constant 0 : index
    %7 = vector.load %arg2[%c0_5, %c0_6] : memref<16x128xf32, #tpu.memory_space<vmem>>, vector<16x128xf32>
    %c0_7 = arith.constant 0 : index
    %c0_8 = arith.constant 0 : index
    %8 = vector.load %arg3[%c0_7, %c0_8] : memref<16x8xf32, #tpu.memory_space<vmem>>, vector<16x8xf32>
    %9 = arith.truncf %6 : vector<32x16xf32> to vector<32x16xbf16>
    %10 = arith.truncf %7 : vector<16x128xf32> to vector<16x128xbf16>
    %cst_9 = arith.constant dense<0.000000e+00> : vector<32x128xf32>
    %11 = tpu.matmul %9, %10, %cst_9 {dimension_numbers = #tpu.dot_dimension_numbers<[1], [0], [0], [1], [0, 0, 1, 1], [], []>} : vector<32x16xbf16>, vector<16x128xbf16>, vector<32x128xf32> -> vector<32x128xf32>
    %cst_10 = arith.constant dense<0.000000e+00> : vector<32x8xf32>
    %12 = tpu.matmul %6, %8, %cst_10 {dimension_numbers = #tpu.dot_dimension_numbers<[1], [0], [0], [1], [0, 0, 1, 1], [], []>} : vector<32x16xf32>, vector<16x8xf32>, vector<32x8xf32> -> vector<32x8xf32>
    %13 = vector.extract_strided_slice %11 {offsets = [0, 0], sizes = [32, 32], strides = [1, 1]} : vector<32x128xf32> to vector<32x32xf32>
    %14 = arith.truncf %13 : vector<32x32xf32> to vector<32x32xbf16>
    %15 = vector.extract_strided_slice %12 {offsets = [0, 0], sizes = [32, 1], strides = [1, 1]} : vector<32x8xf32> to vector<32x1xf32>
    %16 = tpu.transpose %15, [1, 0] : vector<32x1xf32> -> vector<1x32xf32>
    %17 = vector.extract_strided_slice %12 {offsets = [0, 4], sizes = [32, 1], strides = [1, 1]} : vector<32x8xf32> to vector<32x1xf32>
    %18 = vector.broadcast %17 : vector<32x1xf32> to vector<32x32xf32>
    %19 = vector.broadcast %16 : vector<1x32xf32> to vector<32x32xf32>
    %20 = arith.addf %18, %19 : vector<32x32xf32>
    %cst_11 = arith.constant 2.000000e-01 : f32
    %21 = vector.broadcast %cst_11 : f32 to vector<32x32xf32>
    %22 = arith.mulf %21, %20 : vector<32x32xf32>
    %23 = arith.maximumf %20, %22 : vector<32x32xf32>
    %24 = arith.addf %23, %5 : vector<32x32xf32>
    %cst_12 = arith.constant dense<0xFF800000> : vector<32xf32>
    %25 = vector.multi_reduction <maximumf>, %24, %cst_12 [1] : vector<32x32xf32> to vector<32xf32>
    %26 = vector.shape_cast %25 : vector<32xf32> to vector<32x1xf32>
    %27 = vector.broadcast %26 : vector<32x1xf32> to vector<32x32xf32>
    %28 = arith.subf %24, %27 : vector<32x32xf32>
    %29 = math.exp %28 : vector<32x32xf32>
    %cst_13 = arith.constant dense<0.000000e+00> : vector<32xf32>
    %30 = vector.multi_reduction <add>, %29, %cst_13 [1] : vector<32x32xf32> to vector<32xf32>
    %31 = vector.shape_cast %30 : vector<32xf32> to vector<32x1xf32>
    %32 = tpu.reciprocal %31 {approx = true} : vector<32x1xf32> -> vector<32x1xf32>
    %33 = vector.broadcast %32 : vector<32x1xf32> to vector<32x32xf32>
    %34 = arith.mulf %29, %33 : vector<32x32xf32>
    %35 = arith.truncf %34 : vector<32x32xf32> to vector<32x32xbf16>
    %cst_14 = arith.constant dense<0.000000e+00> : vector<32x32xf32>
    %36 = tpu.matmul %35, %14, %cst_14 {dimension_numbers = #tpu.dot_dimension_numbers<[1], [0], [0], [1], [0, 0, 1, 1], [], []>} : vector<32x32xbf16>, vector<32x32xbf16>, vector<32x32xf32> -> vector<32x32xf32>
    %37 = vector.extract_strided_slice %11 {offsets = [0, 32], sizes = [32, 32], strides = [1, 1]} : vector<32x128xf32> to vector<32x32xf32>
    %38 = arith.truncf %37 : vector<32x32xf32> to vector<32x32xbf16>
    %39 = vector.extract_strided_slice %12 {offsets = [0, 1], sizes = [32, 1], strides = [1, 1]} : vector<32x8xf32> to vector<32x1xf32>
    %40 = tpu.transpose %39, [1, 0] : vector<32x1xf32> -> vector<1x32xf32>
    %41 = vector.extract_strided_slice %12 {offsets = [0, 5], sizes = [32, 1], strides = [1, 1]} : vector<32x8xf32> to vector<32x1xf32>
    %42 = vector.broadcast %41 : vector<32x1xf32> to vector<32x32xf32>
    %43 = vector.broadcast %40 : vector<1x32xf32> to vector<32x32xf32>
    %44 = arith.addf %42, %43 : vector<32x32xf32>
    %cst_15 = arith.constant 2.000000e-01 : f32
    %45 = vector.broadcast %cst_15 : f32 to vector<32x32xf32>
    %46 = arith.mulf %45, %44 : vector<32x32xf32>
    %47 = arith.maximumf %44, %46 : vector<32x32xf32>
    %48 = arith.addf %47, %5 : vector<32x32xf32>
    %cst_16 = arith.constant dense<0xFF800000> : vector<32xf32>
    %49 = vector.multi_reduction <maximumf>, %48, %cst_16 [1] : vector<32x32xf32> to vector<32xf32>
    %50 = vector.shape_cast %49 : vector<32xf32> to vector<32x1xf32>
    %51 = vector.broadcast %50 : vector<32x1xf32> to vector<32x32xf32>
    %52 = arith.subf %48, %51 : vector<32x32xf32>
    %53 = math.exp %52 : vector<32x32xf32>
    %cst_17 = arith.constant dense<0.000000e+00> : vector<32xf32>
    %54 = vector.multi_reduction <add>, %53, %cst_17 [1] : vector<32x32xf32> to vector<32xf32>
    %55 = vector.shape_cast %54 : vector<32xf32> to vector<32x1xf32>
    %56 = tpu.reciprocal %55 {approx = true} : vector<32x1xf32> -> vector<32x1xf32>
    %57 = vector.broadcast %56 : vector<32x1xf32> to vector<32x32xf32>
    %58 = arith.mulf %53, %57 : vector<32x32xf32>
    %59 = arith.truncf %58 : vector<32x32xf32> to vector<32x32xbf16>
    %cst_18 = arith.constant dense<0.000000e+00> : vector<32x32xf32>
    %60 = tpu.matmul %59, %38, %cst_18 {dimension_numbers = #tpu.dot_dimension_numbers<[1], [0], [0], [1], [0, 0, 1, 1], [], []>} : vector<32x32xbf16>, vector<32x32xbf16>, vector<32x32xf32> -> vector<32x32xf32>
    %61 = vector.extract_strided_slice %11 {offsets = [0, 64], sizes = [32, 32], strides = [1, 1]} : vector<32x128xf32> to vector<32x32xf32>
    %62 = arith.truncf %61 : vector<32x32xf32> to vector<32x32xbf16>
    %63 = vector.extract_strided_slice %12 {offsets = [0, 2], sizes = [32, 1], strides = [1, 1]} : vector<32x8xf32> to vector<32x1xf32>
    %64 = tpu.transpose %63, [1, 0] : vector<32x1xf32> -> vector<1x32xf32>
    %65 = vector.extract_strided_slice %12 {offsets = [0, 6], sizes = [32, 1], strides = [1, 1]} : vector<32x8xf32> to vector<32x1xf32>
    %66 = vector.broadcast %65 : vector<32x1xf32> to vector<32x32xf32>
    %67 = vector.broadcast %64 : vector<1x32xf32> to vector<32x32xf32>
    %68 = arith.addf %66, %67 : vector<32x32xf32>
    %cst_19 = arith.constant 2.000000e-01 : f32
    %69 = vector.broadcast %cst_19 : f32 to vector<32x32xf32>
    %70 = arith.mulf %69, %68 : vector<32x32xf32>
    %71 = arith.maximumf %68, %70 : vector<32x32xf32>
    %72 = arith.addf %71, %5 : vector<32x32xf32>
    %cst_20 = arith.constant dense<0xFF800000> : vector<32xf32>
    %73 = vector.multi_reduction <maximumf>, %72, %cst_20 [1] : vector<32x32xf32> to vector<32xf32>
    %74 = vector.shape_cast %73 : vector<32xf32> to vector<32x1xf32>
    %75 = vector.broadcast %74 : vector<32x1xf32> to vector<32x32xf32>
    %76 = arith.subf %72, %75 : vector<32x32xf32>
    %77 = math.exp %76 : vector<32x32xf32>
    %cst_21 = arith.constant dense<0.000000e+00> : vector<32xf32>
    %78 = vector.multi_reduction <add>, %77, %cst_21 [1] : vector<32x32xf32> to vector<32xf32>
    %79 = vector.shape_cast %78 : vector<32xf32> to vector<32x1xf32>
    %80 = tpu.reciprocal %79 {approx = true} : vector<32x1xf32> -> vector<32x1xf32>
    %81 = vector.broadcast %80 : vector<32x1xf32> to vector<32x32xf32>
    %82 = arith.mulf %77, %81 : vector<32x32xf32>
    %83 = arith.truncf %82 : vector<32x32xf32> to vector<32x32xbf16>
    %cst_22 = arith.constant dense<0.000000e+00> : vector<32x32xf32>
    %84 = tpu.matmul %83, %62, %cst_22 {dimension_numbers = #tpu.dot_dimension_numbers<[1], [0], [0], [1], [0, 0, 1, 1], [], []>} : vector<32x32xbf16>, vector<32x32xbf16>, vector<32x32xf32> -> vector<32x32xf32>
    %85 = vector.extract_strided_slice %11 {offsets = [0, 96], sizes = [32, 32], strides = [1, 1]} : vector<32x128xf32> to vector<32x32xf32>
    %86 = arith.truncf %85 : vector<32x32xf32> to vector<32x32xbf16>
    %87 = vector.extract_strided_slice %12 {offsets = [0, 3], sizes = [32, 1], strides = [1, 1]} : vector<32x8xf32> to vector<32x1xf32>
    %88 = tpu.transpose %87, [1, 0] : vector<32x1xf32> -> vector<1x32xf32>
    %89 = vector.extract_strided_slice %12 {offsets = [0, 7], sizes = [32, 1], strides = [1, 1]} : vector<32x8xf32> to vector<32x1xf32>
    %90 = vector.broadcast %89 : vector<32x1xf32> to vector<32x32xf32>
    %91 = vector.broadcast %88 : vector<1x32xf32> to vector<32x32xf32>
    %92 = arith.addf %90, %91 : vector<32x32xf32>
    %cst_23 = arith.constant 2.000000e-01 : f32
    %93 = vector.broadcast %cst_23 : f32 to vector<32x32xf32>
    %94 = arith.mulf %93, %92 : vector<32x32xf32>
    %95 = arith.maximumf %92, %94 : vector<32x32xf32>
    %96 = arith.addf %95, %5 : vector<32x32xf32>
    %cst_24 = arith.constant dense<0xFF800000> : vector<32xf32>
    %97 = vector.multi_reduction <maximumf>, %96, %cst_24 [1] : vector<32x32xf32> to vector<32xf32>
    %98 = vector.shape_cast %97 : vector<32xf32> to vector<32x1xf32>
    %99 = vector.broadcast %98 : vector<32x1xf32> to vector<32x32xf32>
    %100 = arith.subf %96, %99 : vector<32x32xf32>
    %101 = math.exp %100 : vector<32x32xf32>
    %cst_25 = arith.constant dense<0.000000e+00> : vector<32xf32>
    %102 = vector.multi_reduction <add>, %101, %cst_25 [1] : vector<32x32xf32> to vector<32xf32>
    %103 = vector.shape_cast %102 : vector<32xf32> to vector<32x1xf32>
    %104 = tpu.reciprocal %103 {approx = true} : vector<32x1xf32> -> vector<32x1xf32>
    %105 = vector.broadcast %104 : vector<32x1xf32> to vector<32x32xf32>
    %106 = arith.mulf %101, %105 : vector<32x32xf32>
    %107 = arith.truncf %106 : vector<32x32xf32> to vector<32x32xbf16>
    %cst_26 = arith.constant dense<0.000000e+00> : vector<32x32xf32>
    %108 = tpu.matmul %107, %86, %cst_26 {dimension_numbers = #tpu.dot_dimension_numbers<[1], [0], [0], [1], [0, 0, 1, 1], [], []>} : vector<32x32xbf16>, vector<32x32xbf16>, vector<32x32xf32> -> vector<32x32xf32>
    %109 = tpu.concatenate %36, %60, %84, %108 in 1 : vector<32x32xf32>, vector<32x32xf32>, vector<32x32xf32>, vector<32x32xf32> -> vector<32x128xf32>
    %c0_27 = arith.constant 0 : index
    %c0_28 = arith.constant 0 : index
    %110 = vector.load %arg4[%c0_27, %c0_28] : memref<1x128xf32, #tpu.memory_space<vmem>>, vector<1x128xf32>
    %111 = vector.broadcast %110 : vector<1x128xf32> to vector<32x128xf32>
    %112 = arith.mulf %109, %111 : vector<32x128xf32>
    %c0_29 = arith.constant 0 : index
    %c0_30 = arith.constant 0 : index
    %113 = vector.load %arg5[%c0_29, %c0_30] : memref<1x128xf32, #tpu.memory_space<vmem>>, vector<1x128xf32>
    %114 = vector.broadcast %113 : vector<1x128xf32> to vector<32x128xf32>
    %115 = arith.addf %112, %114 : vector<32x128xf32>
    %cst_31 = arith.constant 0.000000e+00 : f32
    %116 = vector.broadcast %cst_31 : f32 to vector<32x128xf32>
    %117 = arith.cmpf ogt, %115, %116 : vector<32x128xf32>
    %cst_32 = arith.constant 0.000000e+00 : f32
    %118 = vector.broadcast %cst_32 : f32 to vector<32x128xf32>
    %119 = arith.minimumf %115, %118 : vector<32x128xf32>
    %120 = math.exp %119 : vector<32x128xf32>
    %cst_33 = arith.constant 1.000000e+00 : f32
    %121 = vector.broadcast %cst_33 : f32 to vector<32x128xf32>
    %122 = arith.subf %120, %121 : vector<32x128xf32>
    %123 = arith.select %117, %115, %122 : vector<32x128xi1>, vector<32x128xf32>
    %c0_34 = arith.constant 0 : index
    %c0_35 = arith.constant 0 : index
    %124 = vector.load %arg6[%c0_34, %c0_35] : memref<128x32xf32, #tpu.memory_space<vmem>>, vector<128x32xf32>
    %c0_36 = arith.constant 0 : index
    %c0_37 = arith.constant 0 : index
    %125 = vector.load %arg7[%c0_36, %c0_37] : memref<128x2xf32, #tpu.memory_space<vmem>>, vector<128x2xf32>
    %126 = arith.truncf %123 : vector<32x128xf32> to vector<32x128xbf16>
    %127 = arith.truncf %124 : vector<128x32xf32> to vector<128x32xbf16>
    %cst_38 = arith.constant dense<0.000000e+00> : vector<32x32xf32>
    %128 = tpu.matmul %126, %127, %cst_38 {dimension_numbers = #tpu.dot_dimension_numbers<[1], [0], [0], [1], [0, 0, 1, 1], [], []>} : vector<32x128xbf16>, vector<128x32xbf16>, vector<32x32xf32> -> vector<32x32xf32>
    %cst_39 = arith.constant dense<0.000000e+00> : vector<32x2xf32>
    %129 = tpu.matmul %123, %125, %cst_39 {dimension_numbers = #tpu.dot_dimension_numbers<[1], [0], [0], [1], [0, 0, 1, 1], [], []>} : vector<32x128xf32>, vector<128x2xf32>, vector<32x2xf32> -> vector<32x2xf32>
    %130 = arith.truncf %128 : vector<32x32xf32> to vector<32x32xbf16>
    %131 = vector.extract_strided_slice %129 {offsets = [0, 0], sizes = [32, 1], strides = [1, 1]} : vector<32x2xf32> to vector<32x1xf32>
    %132 = tpu.transpose %131, [1, 0] : vector<32x1xf32> -> vector<1x32xf32>
    %133 = vector.extract_strided_slice %129 {offsets = [0, 1], sizes = [32, 1], strides = [1, 1]} : vector<32x2xf32> to vector<32x1xf32>
    %134 = vector.broadcast %133 : vector<32x1xf32> to vector<32x32xf32>
    %135 = vector.broadcast %132 : vector<1x32xf32> to vector<32x32xf32>
    %136 = arith.addf %134, %135 : vector<32x32xf32>
    %cst_40 = arith.constant 2.000000e-01 : f32
    %137 = vector.broadcast %cst_40 : f32 to vector<32x32xf32>
    %138 = arith.mulf %137, %136 : vector<32x32xf32>
    %139 = arith.maximumf %136, %138 : vector<32x32xf32>
    %140 = arith.addf %139, %5 : vector<32x32xf32>
    %cst_41 = arith.constant dense<0xFF800000> : vector<32xf32>
    %141 = vector.multi_reduction <maximumf>, %140, %cst_41 [1] : vector<32x32xf32> to vector<32xf32>
    %142 = vector.shape_cast %141 : vector<32xf32> to vector<32x1xf32>
    %143 = vector.broadcast %142 : vector<32x1xf32> to vector<32x32xf32>
    %144 = arith.subf %140, %143 : vector<32x32xf32>
    %145 = math.exp %144 : vector<32x32xf32>
    %cst_42 = arith.constant dense<0.000000e+00> : vector<32xf32>
    %146 = vector.multi_reduction <add>, %145, %cst_42 [1] : vector<32x32xf32> to vector<32xf32>
    %147 = vector.shape_cast %146 : vector<32xf32> to vector<32x1xf32>
    %148 = tpu.reciprocal %147 {approx = true} : vector<32x1xf32> -> vector<32x1xf32>
    %149 = vector.broadcast %148 : vector<32x1xf32> to vector<32x32xf32>
    %150 = arith.mulf %145, %149 : vector<32x32xf32>
    %151 = arith.truncf %150 : vector<32x32xf32> to vector<32x32xbf16>
    %cst_43 = arith.constant dense<0.000000e+00> : vector<32x32xf32>
    %152 = tpu.matmul %151, %130, %cst_43 {dimension_numbers = #tpu.dot_dimension_numbers<[1], [0], [0], [1], [0, 0, 1, 1], [], []>} : vector<32x32xbf16>, vector<32x32xbf16>, vector<32x32xf32> -> vector<32x32xf32>
    %c0_44 = arith.constant 0 : index
    %c0_45 = arith.constant 0 : index
    %153 = vector.load %arg8[%c0_44, %c0_45] : memref<1x32xf32, #tpu.memory_space<vmem>>, vector<1x32xf32>
    %154 = vector.broadcast %153 : vector<1x32xf32> to vector<32x32xf32>
    %155 = arith.addf %152, %154 : vector<32x32xf32>
    %c0_46 = arith.constant 0 : index
    %c0_47 = arith.constant 0 : index
    %156 = vector.load %arg9[%c0_46, %c0_47] : memref<32x32xf32, #tpu.memory_space<vmem>>, vector<32x32xf32>
    tpu.vector_store %arg9[%c0_46, %c0_47], %155 {strides = array<i32>} : memref<32x32xf32, #tpu.memory_space<vmem>>, vector<32x32xf32>,
    return
  }
}

</mosaic_0001>

<bundles_post_ra>
// kernel: phylogat_forward.1
= control target key start
LH: loop header
LB: loop body
LE: loop exit
PB: predicated region body
PF: predicated region fallthrough
CT: control target
= control target key end

     0   :  { %vm57_vm0 = vcmask 130048   ;;  %s1833_s0 = inlined_call_operand.vmem [shape: f32[32,16], index: 0, kind: input, shape index: {}]   ;;  %s1834_s1 = inlined_call_operand.vmem [shape: f32[32,32], index: 1, kind: input, shape index: {}]   ;;  %s1835_s2 = inlined_call_operand.vmem [shape: f32[16,128], index: 2, kind: input, shape index: {}]   ;;  %s1836_s3 = inlined_call_operand.vmem [shape: f32[16,8], index: 3, kind: input, shape index: {}]   ;;  %s1837_s4 = inlined_call_operand.vmem [shape: f32[1,128], index: 4, kind: input, shape index: {}]   ;;  %s1838_s5 = inlined_call_operand.vmem [shape: f32[1,128], index: 5, kind: input, shape index: {}]   ;;  %s1839_s6 = inlined_call_operand.vmem [shape: f32[128,32], index: 6, kind: input, shape index: {}]   ;;  %s1840_s7 = inlined_call_operand.vmem [shape: f32[128,2], index: 7, kind: input, shape index: {}]   ;;  %s1841_s8 = inlined_call_operand.vmem [shape: f32[1,32], index: 8, kind: input, shape index: {}]   ;;  %s1842_s9 = inlined_call_operand.hbm [shape: f32[32,32], index: 9, kind: output, shape index: {}]  }
   0x1   :  { %v50_v0 = vld [vmem:[%s1835_s2] sm:$0xff]  ;;  %v51_v1 = vld [vmem:[%s1835_s2 + $0x8] sm:$0xff]  ;;  %v48_v2 = vld [vmem:[%s1833_s0 + $0x10] sm:$0xff] }
   0x2   :  { %v56_v3 = vpack.c.bf16 %v51_v1, %v50_v0  ;;  %v49_v4 = vld [vmem:[%s1833_s0 + $0x18] sm:$0xff]  ;;  %v53_v5 = vld [vmem:[%s1836_s3 + $0x8] sm:$0xff]  ;;  %v46_v7 = vld [vmem:[%s1833_s0] sm:$0xff] }
   0x3   :  { %v55_v6 = vpack.c.bf16 %v49_v4, %v48_v2  ;;  %v47_v8 = vld [vmem:[%s1833_s0 + $0x8] sm:$0xff] }
   0x4   :  { %1111 = vmatpush.bf16.msra.mxu1 %v56_v3  ;;  %v54_v9 = vpack.c.bf16 %v47_v8, %v46_v7  ;;  %71 = vmatpush.bf16.msra.mxu0 %v56_v3 }
   0x5   :  { %14 = vsyncpa [#allocation3], 0  ;;  %v52_v10 = vld [vmem:[%s1836_s3] sm:$0xff]  ;;  %v1263_v11 = vmov 6   ;;  %v1264_v12 = vmov 5   ;;  %v1265_v13 = vmov 4  }
   0x6   :  { %1129 = vset.pattern.permute.xlu2 %v1263_v11  ;;  %1128 = vset.pattern.permute.xlu0 %v1264_v12  ;;  %s1266_s0 = smov 125   ;;  %s1267_s3 = smov 126   ;;  %v1269_v19 = vmov 7   ;;  %v35_v52 = vld [vmem:[%s1834_s1 + $0x8] sm:$0xff]  ;;  %v34_v53 = vld [vmem:[%s1834_s1] sm:$0xff]  ;;  %vm195_vm3 = vcmask 261120  }
   0x7   :  { %1092 = vmatmul.msk.bf16.vlgmr.msra.gmra.mxu1 %vm57_vm0, %v55_v6  ;;  %1091 = vmatmul.msk.bf16.vlgmr.msra.gmra.mxu0 %vm57_vm0, %v54_v9  ;;  %s1268_s24 = smov 127   ;;  %vm39_vm1 = vcmp.gt.f32.partialorder %v35_v52, 0.0  ;;  %vm38_vm2 = vcmp.gt.f32.partialorder %v34_v53, 0.0  ;;  %v1270_v63 = vmov -1e+30   ;;  %v36_v53 = vld [vmem:[%s1834_s1 + $0x10] sm:$0xff] }
   0x8   :  { %109 = vmatpush.msrb.mxu1 %v53_v5  ;;  %1131 = vset.pattern.permute.xlu1 %v1265_v13  ;;  %v1440_v0 = vsel %vm39_vm1, 0.0, %v1270_v63  ;;  %v1443_v1 = vsel %vm38_vm2, 0.0, %v1270_v63  ;;  %vm40_vm4 = vcmp.gt.f32.partialorder %v36_v53, 0.0  ;;  %s1272_s12 = smov 64   ;;  %s1273_s13 = smov 32   ;;  %vm783_vm6 = vcmask 523264  }
   0x9   :  { %vm788_vm7 = vcmask 785408   ;;  %s1079_s10 = sshll.u32 %s1842_s9, 4  ;;  %s1277_s11 = smov 8   ;;  %s1080_s10 = int_to_ptr.hbm [resolvable:$true] %s1079_s10 }
   0xa   :  { %110 = vmatpush.msrb.mxu1 %v52_v10 }
  0x17   :  { %1093 = vmatmul.msk.f32.vlgmr.msrb.gmra.mxu1 %vm57_vm0, %v46_v7 }
  0x1f   :  { %1094 = vmatmul.msk.f32.gmra.mxu1 %vm57_vm0, %v47_v8 }
  0x27   :  { %1095 = vmatmul.msk.f32.gmra.mxu1 %vm57_vm0, %v48_v2 }
  0x2f   :  { %1096 = vmatmul.msk.f32.gmra.mxu1 %vm57_vm0, %v49_v4 }
  0x84   :  { %v78_v14 = vpop.f32.mrf.mxu1 }
  0x8c   :  { %v80_v15 = vpop.f32.mrf.mxu1 }
  0x8d   :  { %v1352_v16 = vpack.c.bf16 %v80_v15, %v78_v14 }
  0x8f   :  { %254 = vmatpush.bf16.msra.mxu2 %v1352_v16 }
  0x94   :  { %v1355_v17 = vpop.f32.mrf.mxu1 }
  0x95   :  { %577 = vrot.lane.b32.xlu2 %v1355_v17, %s1266_s0  ;;  %423 = vrot.lane.b32.xlu1 %v1355_v17, %s1267_s3 }
  0x96   :  { %267 = vrot.lane.b32.xlu0 %v1355_v17, %s1268_s24 }
  0x9c   :  { %v1366_v18 = vpop.f32.mrf.mxu1 }
  0x9d   :  { %468 = vperm.xlu2 %1129, %v1355_v17   ;;  %160 = vperm.xlu1 %1131, %v1355_v17  }
  0x9e   :  { %312 = vperm.xlu0 %1128, %v1355_v17  }
  0xa4   :  { %v1373_v20 = vpop.f32.mrf.mxu1 }
  0xa5   :  { %1130 = vset.pattern.permute.xlu2 %v1269_v19  ;;  %579 = vrot.lane.b32.xlu1 %v1366_v18, %s1266_s0 }
  0xa6   :  { %269 = vrot.lane.b32.xlu0 %v1366_v18, %s1268_s24  ;;  %622 = vperm.xlu2 %1130, %v1355_v17  }
  0xa7   :  { %1132 = vset.pattern.permute.xlu1 %v1264_v12  ;;  %1134 = vset.pattern.permute.xlu0 %v1269_v19 }
  0xac   :  { %v1388_v21 = vpop.f32.mrf.mxu1 }
  0xad   :  { %316 = vperm.xlu1 %1132, %v1366_v18  }
  0xae   :  { %425 = vrot.lane.b32.xlu0 %v1366_v18, %s1267_s3  ;;  %427 = vrot.lane.b32.xlu2 %v1373_v20, %s1267_s3 }
  0xaf   :  { %1136 = vset.pattern.permute.xlu2 %v1263_v11 }
  0xb5   :  { %1133 = vset.pattern.permute.xlu1 %v1263_v11 }
  0xb6   :  { %626 = vperm.xlu0 %1134, %v1366_v18   ;;  %472 = vperm.xlu1 %1133, %v1366_v18  }
  0xb7   :  { %476 = vperm.xlu2 %1136, %v1373_v20  }
  0xbe   :  { %581 = vrot.lane.b32.xlu0 %v1373_v20, %s1266_s0  ;;  %271 = vrot.lane.b32.xlu1 %v1373_v20, %s1268_s24 }
  0xbf   :  { %1137 = vset.pattern.permute.xlu2 %v1269_v19  ;;  %1139 = vset.pattern.permute.xlu0 %v1263_v11 }
  0xc0   :  { %630 = vperm.xlu2 %1137, %v1373_v20   ;;  %1135 = vset.pattern.permute.xlu1 %v1264_v12 }
  0xc6   :  { %480 = vperm.xlu0 %1139, %v1388_v21   ;;  %320 = vperm.xlu1 %1135, %v1373_v20  }
  0xc8   :  { %273 = vrot.lane.b32.xlu2 %v1388_v21, %s1268_s24 }
  0xc9   :  { %1138 = vset.pattern.permute.xlu2 %v1264_v12 }
  0xce   :  { %1140 = vset.pattern.permute.xlu0 %v1265_v13  ;;  %429 = vrot.lane.b32.xlu1 %v1388_v21, %s1267_s3 }
  0xcf   :  { %165 = vperm.xlu0 %1140, %v1366_v18  }
  0xd0   :  { %583 = vrot.lane.b32.xlu2 %v1388_v21, %s1266_s0 }
  0xd7   :  { %170 = vperm.xlu0 %1140, %v1373_v20  }
  0xd8   :  { %324 = vperm.xlu2 %1138, %v1388_v21  }
  0xe0   :  { %1141 = vset.pattern.permute.xlu2 %v1269_v19 }
  0xe1   :  { %634 = vperm.xlu2 %1141, %v1388_v21  }
  0xe9   :  { %1142 = vset.pattern.permute.xlu2 %v1265_v13 }
  0xea   :  { %175 = vperm.xlu2 %1142, %v1388_v21  }
  0xef   :  { %v578_v22 = vpop.permute.xlu2 %577 }
  0xf7   :  { %v1403_v23 = vpop.permute.xlu2 %468 }
 0x100   :  { %v623_v24 = vpop.permute.xlu2 %622 }
 0x107   :  { %v424_v25 = vpop.permute.xlu1 %423 }
 0x108   :  { %v268_v26 = vpop.permute.xlu0 %267  ;;  %435 = vxpose.xlu0.b32.start [1/4] (short) (narrow) %v424_v25, 8  ;;  %v428_v28 = vpop.permute.xlu2 %427 }
 0x109   :  { %279 = vxpose.xlu1.b32.start [1/4] (short) (narrow) %v268_v26, 8 }
 0x10f   :  { %v1405_v27 = vpop.permute.xlu1 %160 }
 0x110   :  { %v313_v29 = vpop.permute.xlu0 %312  ;;  %589 = vxpose.xlu2.b32.start [1/4] (short) (narrow) %v578_v22, 8 }
 0x111   :  { %v1407_v32 = vpop.permute.xlu2 %476 }
 0x117   :  { %v580_v30 = vpop.permute.xlu1 %579 }
 0x118   :  { %v270_v31 = vpop.permute.xlu0 %269  ;;  %590 = vxpose.xlu2.b32.cont [2/4] (short) (narrow) %v580_v30, 8 }
 0x119   :  { %280 = vxpose.xlu1.b32.cont [2/4] (short) (narrow) %v270_v31, 8 }
 0x11a   :  { %v1409_v35 = vpop.permute.xlu2 %630 }
 0x11f   :  { %v317_v33 = vpop.permute.xlu1 %316 }
 0x120   :  { %v426_v34 = vpop.permute.xlu0 %425 }
 0x121   :  { %436 = vxpose.xlu0.b32.cont [2/4] (short) (narrow) %v426_v34, 8 }
 0x122   :  { %v274_v38 = vpop.permute.xlu2 %273 }
 0x128   :  { %v1411_v36 = vpop.permute.xlu0 %626  ;;  %v473_v37 = vpop.permute.xlu1 %472 }
 0x129   :  { %437 = vxpose.xlu0.b32.cont [3/4] (short) (narrow) %v428_v28, 8 }
 0x12a   :  { %v584_v41 = vpop.permute.xlu2 %583 }
 0x130   :  { %v582_v39 = vpop.permute.xlu0 %581  ;;  %v272_v40 = vpop.permute.xlu1 %271 }
 0x131   :  { %591 = vxpose.xlu2.b32.cont [3/4] (short) (narrow) %v582_v39, 8  ;;  %281 = vxpose.xlu1.b32.cont [3/4] (short) (narrow) %v272_v40, 8 }
 0x132   :  { %v1415_v44 = vpop.permute.xlu2 %324 }
 0x138   :  { %v1413_v42 = vpop.permute.xlu1 %320  ;;  %v1417_v45 = vpop.permute.xlu0 %480 }
 0x139   :  { %592 = vxpose.xlu2.b32.end [4/4] (short) (narrow) %v584_v41, 8  ;;  %282 = vxpose.xlu1.b32.end [4/4] (short) (narrow) %v274_v38, 8 }
 0x13b   :  { %v1419_v46 = vpop.permute.xlu2 %634 }
 0x140   :  { %v430_v43 = vpop.permute.xlu1 %429 }
 0x141   :  { %438 = vxpose.xlu0.b32.end [4/4] (short) (narrow) %v430_v43, 8  ;;  %v1421_v47 = vpop.permute.xlu0 %165 }
 0x144   :  { %v1423_v48 = vpop.permute.xlu2 %175 }
 0x149   :  { %v1425_v49 = vpop.permute.xlu0 %170 }
 0x1ba   :  { %v605_v54 = vpop.trf.xlu2 }
 0x1bb   :  { %v1437_v59 = vperm.slane %v605_v54, 0 }
 0x1bd   :  { %v638_v5 = vadd.f32 %v1437_v59, %v623_v24 }
 0x1bf   :  { %v642_v14 = vmul.f32 0.2, %v638_v5 }
 0x1c1   :  { %v646_v25 = vmax.f32 %v638_v5, %v642_v14  ;;  %v37_v5 = vld [vmem:[%s1834_s1 + $0x18] sm:$0xff]  ;;  %s1271_s1 = smov 96  }
 0x1c2   :  { %vm41_vm5 = vcmp.gt.f32.partialorder %v37_v5, 0.0 }
 0x1c5   :  { %v295_v50 = vpop.trf.xlu1 }
 0x1c6   :  { %v1427_v51 = vperm.slane %v295_v50, 0 }
 0x1c8   :  { %v329_v55 = vadd.f32 %v1427_v51, %v317_v33  ;;  %v328_v56 = vadd.f32 %v1427_v51, %v313_v29 }
 0x1ca   :  { %v333_v57 = vmul.f32 0.2, %v329_v55  ;;  %v332_v58 = vmul.f32 0.2, %v328_v56 }
 0x1cc   :  { %v337_v60 = vmax.f32 %v329_v55, %v333_v57  ;;  %v336_v61 = vmax.f32 %v328_v56, %v332_v58 }
 0x1cd   :  { %v451_v62 = vpop.trf.xlu0 }
 0x1ce   :  { %v1445_v2 = vperm.slane %v451_v62, 0  ;;  %v1448_v3 = vadd.f32 %v337_v60, %v1440_v0  ;;  %v1451_v4 = vadd.f32 %v336_v61, %v1443_v1  ;;  %v1508_v60 = vsel %vm40_vm4, 0.0, %v1270_v63 }
 0x1d0   :  { %v347_v6 = vsel %vm195_vm3, %v1448_v3, -inf  ;;  %v344_v7 = vsel %vm195_vm3, %v1451_v4, -inf  ;;  %v485_v8 = vadd.f32 %v1445_v2, %v473_v37  ;;  %v484_v9 = vadd.f32 %v1445_v2, %v1403_v23 }
 0x1d1   :  { %348 = vmax.xlane.f32.xlu1 %v347_v6  ;;  %345 = vmax.xlane.f32.xlu2 %v344_v7  ;;  %v1469_v23 = vadd.f32 %v646_v25, %v1443_v1  ;;  %v487_v58 = vadd.f32 %v1445_v2, %v1417_v45  ;;  %v331_v45 = vadd.f32 %v1427_v51, %v1415_v44 }
 0x1d2   :  { %v489_v10 = vmul.f32 0.2, %v485_v8  ;;  %v488_v11 = vmul.f32 0.2, %v484_v9  ;;  %v641_v7 = vadd.f32 %v1437_v59, %v1419_v46 }
 0x1d3   :  { %v654_v26 = vsel %vm195_vm3, %v1469_v23, -inf  ;;  %v491_v6 = vmul.f32 0.2, %v487_v58 }
 0x1d4   :  { %v493_v12 = vmax.f32 %v485_v8, %v489_v10  ;;  %v492_v13 = vmax.f32 %v484_v9, %v488_v11  ;;  %v645_v14 = vmul.f32 0.2, %v641_v7 }
 0x1d5   :  { %v495_v11 = vmax.f32 %v487_v58, %v491_v6 }
 0x1d6   :  { %v497_v15 = vadd.f32 %v493_v12, %v1440_v0  ;;  %v1463_v19 = vadd.f32 %v492_v13, %v1443_v1  ;;  %v1528_v12 = vsel %vm41_vm5, 0.0, %v1270_v63  ;;  %v335_v13 = vmul.f32 0.2, %v331_v45 }
 0x1d7   :  { %v1534_v46 = vadd.f32 %v495_v11, %v1528_v12  ;;  %v486_v63 = vadd.f32 %v1445_v2, %v1407_v32 }
 0x1d8   :  { %v503_v22 = vsel %vm195_vm3, %v497_v15, -inf  ;;  %v500_v24 = vsel %vm195_vm3, %v1463_v19, -inf }
 0x1d9   :  { %504 = vmax.xlane.f32.xlu1 %v503_v22  ;;  %501 = vmax.xlane.f32.xlu0 %v500_v24  ;;  %v509_v24 = vsel %vm195_vm3, %v1534_v46, -inf }
 0x1e1   :  { %655 = vmax.xlane.f32.xlu1 %v654_v26 }
 0x21b   :  { %126 = vxpose.xlu1.b32.start [1/4] (short) (narrow) %v1355_v17, 8 }
 0x223   :  { %127 = vxpose.xlu1.b32.cont [2/4] (short) (narrow) %v1366_v18, 8 }
 0x22b   :  { %128 = vxpose.xlu1.b32.cont [3/4] (short) (narrow) %v1373_v20, 8  ;;  %v639_v20 = vadd.f32 %v1437_v59, %v1411_v36 }
 0x22d   :  { %v643_v43 = vmul.f32 0.2, %v639_v20 }
 0x233   :  { %129 = vxpose.xlu1.b32.end [4/4] (short) (narrow) %v1388_v21, 8 }
 0x244   :  { %v1477_v28 = vpop.xlane.xlu1 %348 }
 0x24c   :  { %v505_v29 = vpop.xlane.xlu1 %504 }
 0x24d   :  { %v513_v30 = vsub.f32 %v497_v15, %v505_v29  ;;  %v649_v15 = vmax.f32 %v641_v7, %v645_v14 }
 0x24f   :  { %v518_v31 = vmul.f32 1.442695, %v513_v30  ;;  %v1547_v29 = vadd.f32 %v649_v15, %v1528_v12  ;;  %v490_v30 = vmul.f32 0.2, %v486_v63 }
 0x251   :  { %1149 = vpow2.f32 %v518_v31  ;;  %v494_v2 = vmax.f32 %v486_v63, %v490_v30 }
 0x254   :  { %v1483_v37 = vpop.xlane.xlu1 %655 }
 0x255   :  { %v666_v6 = vsub.f32 %v1469_v23, %v1483_v37 }
 0x257   :  { %v1479_v33 = vpop.eup %1149 }
 0x258   :  { %v527_v34 = vsel %vm195_vm3, %v1479_v33, 0.0 }
 0x293   :  { %528 = vadd.xlane.f32.xlu1 %v527_v34  ;;  %v357_v34 = vsub.f32 %v1448_v3, %v1477_v28 }
 0x2bf   :  { %v142_v17 = vpop.trf.xlu1 }
 0x2c0   :  { %v178_v18 = vperm.slane %v142_v17, 0  ;;  %v640_v17 = vadd.f32 %v1437_v59, %v1409_v35 }
 0x2c2   :  { %v179_v21 = vadd.f32 %v178_v18, %v1405_v27  ;;  %v180_v38 = vadd.f32 %v178_v18, %v1421_v47  ;;  %v181_v39 = vadd.f32 %v178_v18, %v1425_v49  ;;  %v647_v27 = vmax.f32 %v639_v20, %v643_v43 }
 0x2c3   :  { %v330_v47 = vadd.f32 %v1427_v51, %v1413_v42  ;;  %v339_v51 = vmax.f32 %v331_v45, %v335_v13  ;;  %v182_v25 = vadd.f32 %v178_v18, %v1423_v48  ;;  %v663_v48 = vsel %vm195_vm3, %v1547_v29, -inf }
 0x2c4   :  { %v183_v40 = vmul.f32 0.2, %v179_v21  ;;  %v184_v41 = vmul.f32 0.2, %v180_v38  ;;  %v185_v54 = vmul.f32 0.2, %v181_v39  ;;  %v1514_v42 = vadd.f32 %v647_v27, %v1440_v0 }
 0x2c5   :  { %v334_v62 = vmul.f32 0.2, %v330_v47  ;;  %v1544_v26 = vadd.f32 %v339_v51, %v1528_v12  ;;  %v186_v31 = vmul.f32 0.2, %v182_v25  ;;  %v362_v20 = vmul.f32 1.442695, %v357_v34 }
 0x2c6   :  { %v187_v50 = vmax.f32 %v179_v21, %v183_v40  ;;  %v188_v52 = vmax.f32 %v180_v38, %v184_v41  ;;  %v189_v57 = vmax.f32 %v181_v39, %v185_v54  ;;  %v657_v9 = vsel %vm195_vm3, %v1514_v42, -inf  ;;  %v502_v21 = vpop.xlane.xlu0 %501  ;;  %v73_v41 = vpop.f32.mrf.mxu0 }
 0x2c7   :  { %v338_v10 = vmax.f32 %v330_v47, %v334_v62  ;;  %v353_v32 = vsel %vm195_vm3, %v1544_v26, -inf  ;;  %v190_v18 = vmax.f32 %v182_v25, %v186_v31  ;;  %v1558_v38 = vadd.f32 %v494_v2, %v1508_v60 }
 0x2c8   :  { %v1494_v55 = vadd.f32 %v187_v50, %v1443_v1  ;;  %v1497_v36 = vadd.f32 %v188_v52, %v1440_v0  ;;  %v1511_v61 = vadd.f32 %v189_v57, %v1508_v60  ;;  %v644_v28 = vmul.f32 0.2, %v640_v17 }
 0x2c9   :  { %v1531_v44 = vadd.f32 %v338_v10, %v1508_v60  ;;  %v1561_v3 = vadd.f32 %v190_v18, %v1528_v12  ;;  %1151 = vpow2.f32 %v362_v20  ;;  %v512_v35 = vsub.f32 %v1463_v19, %v502_v21 }
 0x2ca   :  { %v196_v49 = vsel %vm195_vm3, %v1494_v55, -inf  ;;  %v199_v56 = vsel %vm195_vm3, %v1497_v36, -inf  ;;  %v202_v8 = vsel %vm195_vm3, %v1511_v61, -inf  ;;  %v506_v59 = vsel %vm195_vm3, %v1558_v38, -inf }
 0x2cb   :  { %197 = vmax.xlane.f32.xlu0 %v196_v49  ;;  %200 = vmax.xlane.f32.xlu2 %v199_v56  ;;  %v350_v22 = vsel %vm195_vm3, %v1531_v44, -inf  ;;  %v205_v39 = vsel %vm195_vm3, %v1561_v3, -inf  ;;  %v648_v40 = vmax.f32 %v640_v17, %v644_v28  ;;  %v516_v43 = vmul.f32 1.442695, %v512_v35  ;;  %v346_v56 = vpop.xlane.xlu2 %345 }
 0x2cc   :  { %v356_v57 = vsub.f32 %v1451_v4, %v346_v56  ;;  %v670_v45 = vmul.f32 1.442695, %v666_v6 }
 0x2cd   :  { %v1569_v50 = vadd.f32 %v648_v40, %v1508_v60  ;;  %1153 = vpow2.f32 %v516_v43 }
 0x2ce   :  { %v75_v54 = vpop.f32.mrf.mxu0  ;;  %v360_v58 = vmul.f32 1.442695, %v356_v57 }
 0x2cf   :  { %v1571_v52 = vpop.eup %1151  ;;  %v660_v19 = vsel %vm195_vm3, %v1569_v50, -inf  ;;  %v124_v27 = vpack.c.bf16 %v75_v54, %v73_v41 }
 0x2d0   :  { %v371_v53 = vsel %vm195_vm3, %v1571_v52, 0.0  ;;  %1155 = vpow2.f32 %v360_v58 }
 0x2d1   :  { %255 = vmatpush.bf16.msra.mxu2 %v124_v27  ;;  %1157 = vpow2.f32 %v670_v45 }
 0x2d3   :  { %203 = vmax.xlane.f32.xlu0 %v202_v8  ;;  %658 = vmax.xlane.f32.xlu2 %v657_v9  ;;  %v1577_v47 = vpop.eup %1153 }
 0x2d4   :  { %v524_v49 = vsel %vm195_vm3, %v1577_v47, 0.0 }
 0x2d6   :  { %v1589_v62 = vpop.eup %1155 }
 0x2d7   :  { %v368_v5 = vsel %vm195_vm3, %v1589_v62, 0.0  ;;  %v1596_v10 = vpop.eup %1157 }
 0x2db   :  { %351 = vmax.xlane.f32.xlu0 %v350_v22  ;;  %510 = vmax.xlane.f32.xlu2 %v509_v24 }
 0x2e3   :  { %354 = vmax.xlane.f32.xlu0 %v353_v32  ;;  %664 = vmax.xlane.f32.xlu2 %v663_v48 }
 0x2eb   :  { %507 = vmax.xlane.f32.xlu0 %v506_v59  ;;  %206 = vmax.xlane.f32.xlu2 %v205_v39 }
 0x2f3   :  { %661 = vmax.xlane.f32.xlu0 %v660_v19  ;;  %372 = vadd.xlane.f32.xlu2 %v371_v53 }
 0x2fb   :  { %525 = vadd.xlane.f32.xlu2 %v524_v49 }
 0x307   :  { %394 = vrot.lane.b32.xlu0 %v1352_v16, %s1271_s1 }
 0x313   :  { %392 = vrot.lane.b32.xlu2 %v124_v27, %s1271_s1 }
 0x31b   :  { %548 = vrot.lane.b32.xlu2 %v1352_v16, %s1272_s12 }
 0x323   :  { %702 = vrot.lane.b32.xlu2 %v1352_v16, %s1273_s13  ;;  %v678_v16 = vsel %vm195_vm3, %v1596_v10, 0.0 }
 0x331   :  { %369 = vadd.xlane.f32.xlu0 %v368_v5 }
 0x33e   :  { %v198_v7 = vpop.xlane.xlu0 %197  ;;  %v201_v8 = vpop.xlane.xlu2 %200 }
 0x33f   :  { %v208_v2 = vsub.f32 %v1494_v55, %v198_v7  ;;  %v209_v18 = vsub.f32 %v1497_v36, %v201_v8 }
 0x341   :  { %v214_v28 = vmul.f32 1.442695, %v209_v18 }
 0x345   :  { %546 = vrot.lane.b32.xlu0 %v124_v27, %s1272_s12 }
 0x346   :  { %v204_v4 = vpop.xlane.xlu0 %203  ;;  %v659_v9 = vpop.xlane.xlu2 %658 }
 0x347   :  { %v667_v34 = vsub.f32 %v1514_v42, %v659_v9  ;;  %v212_v42 = vmul.f32 1.442695, %v208_v2  ;;  %v210_v55 = vsub.f32 %v1511_v61, %v204_v4 }
 0x349   :  { %v672_v20 = vmul.f32 1.442695, %v667_v34 }
 0x34c   :  { %679 = vadd.xlane.f32.xlu2 %v678_v16 }
 0x34d   :  { %700 = vrot.lane.b32.xlu0 %v124_v27, %s1273_s13 }
 0x34e   :  { %v352_v11 = vpop.xlane.xlu0 %351  ;;  %v511_v13 = vpop.xlane.xlu2 %510 }
 0x34f   :  { %v515_v51 = vsub.f32 %v1534_v46, %v511_v13  ;;  %v358_v35 = vsub.f32 %v1531_v44, %v352_v11  ;;  %v216_v44 = vmul.f32 1.442695, %v210_v55 }
 0x351   :  { %v522_v22 = vmul.f32 1.442695, %v515_v51  ;;  %v364_v40 = vmul.f32 1.442695, %v358_v35  ;;  %v529_v51 = vpop.xlane.xlu1 %528 }
 0x356   :  { %v355_v14 = vpop.xlane.xlu0 %354  ;;  %v665_v23 = vpop.xlane.xlu2 %664 }
 0x357   :  { %v359_v37 = vsub.f32 %v1544_v26, %v355_v14  ;;  %v669_v30 = vsub.f32 %v1547_v29, %v665_v23 }
 0x359   :  { %v366_v15 = vmul.f32 1.442695, %v359_v37  ;;  %v676_v17 = vmul.f32 1.442695, %v669_v30 }
 0x35b   :  { %1159 = vpow2.f32 %v366_v15 }
 0x35c   :  { %1161 = vpow2.f32 %v522_v22 }
 0x35d   :  { %1163 = vpow2.f32 %v676_v17 }
 0x35e   :  { %v508_v24 = vpop.xlane.xlu0 %507  ;;  %v207_v63 = vpop.xlane.xlu2 %206 }
 0x35f   :  { %v211_v41 = vsub.f32 %v1561_v3, %v207_v63  ;;  %v514_v61 = vsub.f32 %v1558_v38, %v508_v24 }
 0x361   :  { %v1603_v25 = vpop.eup %1159  ;;  %v218_v53 = vmul.f32 1.442695, %v211_v41  ;;  %v520_v56 = vmul.f32 1.442695, %v514_v61 }
 0x362   :  { %v377_v31 = vsel %vm195_vm3, %v1603_v25, 0.0  ;;  %v1611_v46 = vpop.eup %1161 }
 0x363   :  { %378 = vadd.xlane.f32.xlu2 %v377_v31  ;;  %v533_v21 = vsel %vm195_vm3, %v1611_v46, 0.0  ;;  %v1619_v39 = vpop.eup %1163 }
 0x366   :  { %v662_v26 = vpop.xlane.xlu0 %661  ;;  %v1609_v32 = vpop.xlane.xlu2 %372 }
 0x367   :  { %v668_v48 = vsub.f32 %v1569_v50, %v662_v26  ;;  %v687_v50 = vsel %vm195_vm3, %v1619_v39, 0.0 }
 0x369   :  { %v674_v29 = vmul.f32 1.442695, %v668_v48 }
 0x36b   :  { %1165 = vpow2.f32 %v674_v29  ;;  %534 = vadd.xlane.f32.xlu2 %v533_v21 }
 0x36c   :  { %1167 = vpow2.f32 %v672_v20 }
 0x36d   :  { %1169 = vpow2.f32 %v212_v42 }
 0x36e   :  { %v526_v59 = vpop.xlane.xlu2 %525  ;;  %1171 = vpow2.f32 %v214_v28 }
 0x36f   :  { %1173 = vpow2.f32 %v364_v40 }
 0x370   :  { %1175 = vpow2.f32 %v216_v44 }
 0x371   :  { %v1622_v36 = vpop.eup %1165  ;;  %1177 = vpow2.f32 %v218_v53 }
 0x372   :  { %v684_v43 = vsel %vm195_vm3, %v1622_v36, 0.0  ;;  %v1629_v19 = vpop.eup %1167  ;;  %1179 = vpow2.f32 %v520_v56 }
 0x373   :  { %685 = vadd.xlane.f32.xlu1 %v684_v43  ;;  %688 = vadd.xlane.f32.xlu2 %v687_v50  ;;  %v1632_v54 = vpop.eup %1169  ;;  %v681_v3 = vsel %vm195_vm3, %v1629_v19, 0.0  ;;  %1181 = vrcp.f32 %v1609_v32 }
 0x374   :  { %v1636_v49 = vpop.eup %1171  ;;  %v220_v58 = vsel %vm195_vm3, %v1632_v54, 0.0 }
 0x375   :  { %v223_v38 = vsel %vm195_vm3, %v1636_v49, 0.0  ;;  %v1642_v5 = vpop.eup %1173 }
 0x376   :  { %v393_v27 = vpop.permute.xlu2 %392  ;;  %v1644_v6 = vpop.eup %1175  ;;  %v374_v7 = vsel %vm195_vm3, %v1642_v5, 0.0 }
 0x377   :  { %682 = vadd.xlane.f32.xlu0 %v681_v3  ;;  %v1648_v8 = vpop.eup %1177  ;;  %v226_v4 = vsel %vm195_vm3, %v1644_v6, 0.0 }
 0x378   :  { %v229_v9 = vsel %vm195_vm3, %v1648_v8, 0.0  ;;  %v1654_v16 = vpop.eup %1179 }
 0x379   :  { %v395_v57 = vpop.permute.xlu0 %394  ;;  %v530_v13 = vsel %vm195_vm3, %v1654_v16, 0.0  ;;  %v1182_v23 = vpop.eup %1181 }
 0x37a   :  { %410 = vmatpush.bf16.msra.mxu3 %v395_v57  ;;  %v385_v22 = vmul.f32 %v1182_v23, %v1571_v52 }
 0x37b   :  { %221 = vadd.xlane.f32.xlu1 %v220_v58  ;;  %224 = vadd.xlane.f32.xlu2 %v223_v38 }
 0x37e   :  { %v549_v45 = vpop.permute.xlu2 %548  ;;  %411 = vmatpush.bf16.msra.mxu3 %v393_v27 }
 0x37f   :  { %375 = vadd.xlane.f32.xlu0 %v374_v7  ;;  %564 = vmatpush.bf16.msrb.mxu0 %v549_v45 }
 0x383   :  { %227 = vadd.xlane.f32.xlu1 %v226_v4  ;;  %230 = vadd.xlane.f32.xlu2 %v229_v9 }
 0x386   :  { %v703_v11 = vpop.permute.xlu2 %702 }
 0x387   :  { %531 = vadd.xlane.f32.xlu0 %v530_v13  ;;  %718 = vmatpush.bf16.msra.mxu1 %v703_v11 }
 0x3a4   :  { %v370_v14 = vpop.xlane.xlu0 %369 }
 0x3a5   :  { %1183 = vrcp.f32 %v370_v14 }
 0x3a6   :  { %1185 = vrcp.f32 %v526_v59 }
 0x3a7   :  { %1187 = vrcp.f32 %v529_v51 }
 0x3ab   :  { %v1184_v37 = vpop.eup %1183 }
 0x3ac   :  { %v384_v15 = vmul.f32 %v1184_v37, %v1589_v62  ;;  %v1186_v63 = vpop.eup %1185 }
 0x3ad   :  { %v1188_v30 = vpop.eup %1187  ;;  %v540_v31 = vmul.f32 %v1186_v63, %v1577_v47 }
 0x3ae   :  { %v388_v24 = vpack.c.bf16 %v385_v22, %v384_v15  ;;  %v541_v34 = vmul.f32 %v1188_v30, %v1479_v33  ;;  %v864_v30 = vld [vmem:[%s1840_s7 + $0x78] sm:$0xff] }
 0x3af   :  { %894 = vmatpush.msrb.mxu3 %v864_v30 }
 0x3b0   :  { %1099 = vmatmul.msk.bf16.vlgmr.msra.gmra.mxu3 %vm195_vm3, %v388_v24  ;;  %v544_v26 = vpack.c.bf16 %v541_v34, %v540_v31  ;;  %v863_v31 = vld [vmem:[%s1840_s7 + $0x70] sm:$0xff]  ;;  %v862_v34 = vld [vmem:[%s1840_s7 + $0x68] sm:$0xff] }
 0x3b1   :  { %895 = vmatpush.msrb.mxu3 %v863_v31 }
 0x3b3   :  { %896 = vmatpush.msrb.mxu3 %v862_v34 }
 0x3b7   :  { %v547_v17 = vpop.permute.xlu0 %546 }
 0x3b8   :  { %565 = vmatpush.bf16.msrb.mxu0 %v547_v17  ;;  %v861_v17 = vld [vmem:[%s1840_s7 + $0x60] sm:$0xff] }
 0x3b9   :  { %897 = vmatpush.msrb.mxu3 %v861_v17 }
 0x3bb   :  { %1101 = vmatmul.msk.bf16.vlgmr.msrb.gmra.mxu0 %vm195_vm3, %v544_v26  ;;  %v860_v26 = vld [vmem:[%s1840_s7 + $0x58] sm:$0xff] }
 0x3bc   :  { %898 = vmatpush.msrb.mxu3 %v860_v26 }
 0x3bf   :  { %v701_v32 = vpop.permute.xlu0 %700  ;;  %v680_v62 = vpop.xlane.xlu2 %679 }
 0x3c0   :  { %719 = vmatpush.bf16.msra.mxu1 %v701_v32  ;;  %1189 = vrcp.f32 %v680_v62  ;;  %v847_v32 = vld [vmem:[%s1839_s6 + $0x70] sm:$0xff]  ;;  %v848_v62 = vld [vmem:[%s1839_s6 + $0x78] sm:$0xff] }
 0x3c6   :  { %v1190_v47 = vpop.eup %1189 }
 0x3c7   :  { %v694_v42 = vmul.f32 %v1190_v47, %v1596_v10  ;;  %v856_v47 = vld [vmem:[%s1840_s7 + $0x38] sm:$0xff] }
 0x3d6   :  { %v379_v48 = vpop.xlane.xlu2 %378 }
 0x3de   :  { %v535_v52 = vpop.xlane.xlu2 %534 }
 0x3e6   :  { %v686_v2 = vpop.xlane.xlu1 %685  ;;  %v689_v18 = vpop.xlane.xlu2 %688 }
 0x3ea   :  { %v683_v20 = vpop.xlane.xlu0 %682 }
 0x3eb   :  { %1191 = vrcp.f32 %v683_v20  ;;  %v846_v20 = vld [vmem:[%s1839_s6 + $0x68] sm:$0xff] }
 0x3ee   :  { %v222_v29 = vpop.xlane.xlu1 %221  ;;  %v225_v21 = vpop.xlane.xlu2 %224 }
 0x3ef   :  { %1193 = vrcp.f32 %v222_v29 }
 0x3f0   :  { %1195 = vrcp.f32 %v225_v21  ;;  %v857_v21 = vld [vmem:[%s1840_s7 + $0x40] sm:$0xff] }
 0x3f1   :  { %v1192_v33 = vpop.eup %1191  ;;  %1197 = vrcp.f32 %v379_v48  ;;  %v859_v48 = vld [vmem:[%s1840_s7 + $0x50] sm:$0xff] }
 0x3f2   :  { %v695_v28 = vmul.f32 %v1192_v33, %v1629_v19  ;;  %v376_v35 = vpop.xlane.xlu0 %375  ;;  %899 = vmatpush.msrb.mxu3 %v859_v48  ;;  %v843_v33 = vld [vmem:[%s1839_s6 + $0x50] sm:$0xff]  ;;  %v1274_v48 = vmov 1  }
 0x3f3   :  { %1199 = vrcp.f32 %v376_v35  ;;  %1143 = vset.pattern.permute.xlu1 %v1274_v48  ;;  %1144 = vset.pattern.permute.xlu2 %v1274_v48 }
 0x3f4   :  { %v698_v59 = vpack.c.bf16 %v695_v28, %v694_v42  ;;  %1201 = vrcp.f32 %v686_v2  ;;  %v858_v2 = vld [vmem:[%s1840_s7 + $0x48] sm:$0xff]  ;;  %v844_v42 = vld [vmem:[%s1839_s6 + $0x58] sm:$0xff]  ;;  %v855_v28 = vld [vmem:[%s1840_s7 + $0x30] sm:$0xff]  ;;  %1145 = vset.pattern.permute.xlu0 %v1274_v48 }
 0x3f5   :  { %v1194_v55 = vpop.eup %1193  ;;  %1203 = vrcp.f32 %v689_v18  ;;  %900 = vmatpush.msrb.mxu3 %v858_v2  ;;  %v845_v18 = vld [vmem:[%s1839_s6 + $0x60] sm:$0xff]  ;;  %v872_v35 = vpack.c.bf16 %v844_v42, %v843_v33 }
 0x3f6   :  { %v1196_v40 = vpop.eup %1195  ;;  %1103 = vmatmul.msk.bf16.vlgmr.msra.gmra.mxu1 %vm195_vm3, %v698_v59  ;;  %v236_v41 = vmul.f32 %v1194_v55, %v1632_v54  ;;  %v228_v50 = vpop.xlane.xlu1 %227  ;;  %1205 = vrcp.f32 %v535_v52  ;;  %v874_v52 = vpack.c.bf16 %v848_v62, %v847_v32  ;;  %v873_v29 = vpack.c.bf16 %v846_v20, %v845_v18  ;;  %v854_v59 = vld [vmem:[%s1840_s7 + $0x28] sm:$0xff]  ;;  %v841_v55 = vld [vmem:[%s1839_s6 + $0x40] sm:$0xff] }
 0x3f7   :  { %v1198_v43 = vpop.eup %1197  ;;  %v237_v44 = vmul.f32 %v1196_v40, %v1636_v49  ;;  %v231_v10 = vpop.xlane.xlu2 %230  ;;  %1207 = vrcp.f32 %v228_v50  ;;  %901 = vmatpush.msrb.mxu3 %v857_v21  ;;  %v842_v40 = vld [vmem:[%s1839_s6 + $0x48] sm:$0xff]  ;;  %v852_v50 = vld [vmem:[%s1840_s7 + $0x18] sm:$0xff] }
 0x3f8   :  { %v387_v3 = vmul.f32 %v1198_v43, %v1603_v25  ;;  %875 = vmatpush.bf16.msrb.mxu2 %v874_v52  ;;  %v853_v43 = vld [vmem:[%s1840_s7 + $0x20] sm:$0xff] }
 0x3f9   :  { %v1200_v61 = vpop.eup %1199  ;;  %v240_v53 = vpack.c.bf16 %v237_v44, %v236_v41  ;;  %902 = vmatpush.msrb.mxu3 %v856_v47  ;;  %v871_v41 = vpack.c.bf16 %v842_v40, %v841_v55  ;;  %v851_v44 = vld [vmem:[%s1840_s7 + $0x10] sm:$0xff] }
 0x3fa   :  { %v532_v19 = vpop.xlane.xlu0 %531  ;;  %v386_v27 = vmul.f32 %v1200_v61, %v1642_v5  ;;  %v1202_v56 = vpop.eup %1201  ;;  %v839_v61 = vld [vmem:[%s1839_s6 + $0x30] sm:$0xff] }
 0x3fb   :  { %1209 = vrcp.f32 %v532_v19  ;;  %1097 = vmatmul.msk.bf16.vlgmr.msra.gmra.mxu2 %vm195_vm3, %v240_v53  ;;  %v1204_v57 = vpop.eup %1203  ;;  %v696_v38 = vmul.f32 %v1202_v56, %v1622_v36  ;;  %903 = vmatpush.msrb.mxu3 %v855_v28  ;;  %v850_v19 = vld [vmem:[%s1840_s7 + $0x8] sm:$0xff] }
 0x3fc   :  { %1211 = vrcp.f32 %v231_v10  ;;  %v389_v54 = vpack.c.bf16 %v387_v3, %v386_v27  ;;  %v1206_v49 = vpop.eup %1205  ;;  %v697_v45 = vmul.f32 %v1204_v57, %v1619_v39  ;;  %876 = vmatpush.bf16.msrb.mxu2 %v873_v29  ;;  %v840_v10 = vld [vmem:[%s1839_s6 + $0x38] sm:$0xff]  ;;  %v837_v27 = vld [vmem:[%s1839_s6 + $0x20] sm:$0xff]  ;;  %v838_v3 = vld [vmem:[%s1839_s6 + $0x28] sm:$0xff] }
 0x3fd   :  { %v1208_v58 = vpop.eup %1207  ;;  %v543_v25 = vmul.f32 %v1206_v49, %v1611_v46  ;;  %904 = vmatpush.msrb.mxu3 %v854_v59  ;;  %v870_v53 = vpack.c.bf16 %v840_v10, %v839_v61  ;;  %v869_v56 = vpack.c.bf16 %v838_v3, %v837_v27  ;;  %v835_v57 = vld [vmem:[%s1839_s6 + $0x10] sm:$0xff]  ;;  %v836_v49 = vld [vmem:[%s1839_s6 + $0x18] sm:$0xff] }
 0x3fe   :  { %1100 = vmatmul.msk.bf16.gmra.mxu3 %vm195_vm3, %v389_v54  ;;  %v699_v11 = vpack.c.bf16 %v697_v45, %v696_v38  ;;  %v238_v13 = vmul.f32 %v1208_v58, %v1644_v6  ;;  %v849_v54 = vld [vmem:[%s1840_s7] sm:$0xff]  ;;  %v868_v58 = vpack.c.bf16 %v836_v49, %v835_v57 }
 0x3ff   :  { %905 = vmatpush.msrb.mxu3 %v853_v43 }
 0x400   :  { %877 = vmatpush.bf16.msrb.mxu2 %v872_v35 }
 0x401   :  { %v1210_v7 = vpop.eup %1209  ;;  %906 = vmatpush.msrb.mxu3 %v852_v50 }
 0x402   :  { %v1212_v4 = vpop.eup %1211  ;;  %v542_v5 = vmul.f32 %v1210_v7, %v1654_v16  ;;  %v833_v7 = vld [vmem:[%s1839_s6] sm:$0xff] }
 0x403   :  { %v239_v14 = vmul.f32 %v1212_v4, %v1648_v8  ;;  %907 = vmatpush.msrb.mxu3 %v851_v44  ;;  %v834_v4 = vld [vmem:[%s1839_s6 + $0x8] sm:$0xff]  ;;  %s1275_s6 = smov [#allocation2]  }
 0x404   :  { %v545_v9 = vpack.c.bf16 %v543_v25, %v542_v5  ;;  %878 = vmatpush.bf16.msrb.mxu2 %v871_v41  ;;  %v867_v25 = vpack.c.bf16 %v834_v4, %v833_v7  ;;  %s1077_s28 = sshll.u32 %s1275_s6, 4  ;;  %s1078_s28 = int_to_ptr.vmem [resolvable:$true] %s1077_s28 }
 0x405   :  { %v241_v23 = vpack.c.bf16 %v239_v14, %v238_v13  ;;  %908 = vmatpush.msrb.mxu3 %v850_v19  ;;  %v1147_v13 = vld [vmem:[%s1838_s5] ss:$0 sm:$0xff] }
 0x406   :  { %1102 = vmatmul.msk.bf16.gmra.mxu0 %vm195_vm3, %v545_v9  ;;  %1104 = vmatmul.msk.bf16.gmra.mxu1 %vm195_vm3, %v699_v11  ;;  %v1146_v11 = vld [vmem:[%s1837_s4] ss:$0 sm:$0xff] }
 0x407   :  { %909 = vmatpush.msrb.mxu3 %v849_v54 }
 0x408   :  { %879 = vmatpush.bf16.msrb.mxu2 %v870_v53 }
 0x40b   :  { %1098 = vmatmul.msk.bf16.gmra.mxu2 %vm195_vm3, %v241_v23 }
 0x40c   :  { %880 = vmatpush.bf16.msrb.mxu2 %v869_v56 }
 0x410   :  { %881 = vmatpush.bf16.msrb.mxu2 %v868_v58 }
 0x414   :  { %882 = vmatpush.bf16.msrb.mxu2 %v867_v25 }
 0x433   :  { %v413_v39 = vpop.f32.mrf.mxu3 }
 0x434   :  { %735 = vrot.lane.b32.xlu1 %v413_v39, %s1273_s13 }
 0x438   :  { %v567_v36 = vpop.f32.mrf.mxu0 }
 0x439   :  { %751 = vrot.lane.b32.xlu2 %v567_v36, %s1272_s12 }
 0x43b   :  { %v415_v46 = vpop.f32.mrf.mxu3 }
 0x43c   :  { %737 = vrot.lane.b32.xlu1 %v415_v46, %s1273_s13 }
 0x440   :  { %v569_v16 = vpop.f32.mrf.mxu0 }
 0x441   :  { %753 = vrot.lane.b32.xlu2 %v569_v16, %s1272_s12 }
 0x473   :  { %v721_v6 = vpop.f32.mrf.mxu1 }
 0x474   :  { %767 = vrot.lane.b32.xlu0 %v721_v6, %s1271_s1 }
 0x47b   :  { %v723_v8 = vpop.f32.mrf.mxu1 }
 0x47c   :  { %769 = vrot.lane.b32.xlu0 %v723_v8, %s1271_s1 }
 0x47e   :  { %v257_v38 = vpop.f32.mrf.mxu2 }
 0x481   :  { %v418_v37 = vpop.f32.mrf.mxu3 }
 0x482   :  { %739 = vrot.lane.b32.xlu1 %v418_v37, %s1273_s13 }
 0x483   :  { %v572_v51 = vpop.f32.mrf.mxu0  ;;  %v726_v15 = vpop.f32.mrf.mxu1 }
 0x484   :  { %755 = vrot.lane.b32.xlu2 %v572_v51, %s1272_s12  ;;  %771 = vrot.lane.b32.xlu0 %v726_v15, %s1271_s1 }
 0x486   :  { %v259_v36 = vpop.f32.mrf.mxu2 }
 0x489   :  { %v420_v22 = vpop.f32.mrf.mxu3 }
 0x48a   :  { %741 = vrot.lane.b32.xlu1 %v420_v22, %s1273_s13 }
 0x48b   :  { %v574_v24 = vpop.f32.mrf.mxu0  ;;  %v728_v63 = vpop.f32.mrf.mxu1 }
 0x48c   :  { %757 = vrot.lane.b32.xlu2 %v574_v24, %s1272_s12  ;;  %773 = vrot.lane.b32.xlu0 %v728_v63, %s1271_s1 }
 0x48e   :  { %v262_v31 = vpop.f32.mrf.mxu2 }
 0x493   :  { %v752_v5 = vpop.permute.xlu2 %751 }
 0x496   :  { %v264_v28 = vpop.f32.mrf.mxu2 }
 0x49b   :  { %v754_v8 = vpop.permute.xlu2 %753 }
 0x4a6   :  { %v736_v45 = vpop.permute.xlu1 %735 }
 0x4a7   :  { %v779_v9 = vsel %vm195_vm3, %v257_v38, %v736_v45 }
 0x4a8   :  { %v784_v23 = vsel %vm783_vm6, %v779_v9, %v752_v5 }
 0x4ae   :  { %v738_v46 = vpop.permute.xlu1 %737 }
 0x4af   :  { %v780_v37 = vsel %vm195_vm3, %v259_v36, %v738_v46 }
 0x4b0   :  { %v785_v22 = vsel %vm783_vm6, %v780_v37, %v754_v8 }
 0x4de   :  { %v756_v17 = vpop.permute.xlu2 %755 }
 0x4e6   :  { %v768_v14 = vpop.permute.xlu0 %767  ;;  %v758_v55 = vpop.permute.xlu2 %757 }
 0x4e7   :  { %v789_v39 = vsel %vm788_vm7, %v784_v23, %v768_v14 }
 0x4e8   :  { %v797_v16 = vmul.f32 %v1146_v11, %v789_v39 }
 0x4ea   :  { %v805_v6 = vadd.f32 %v1147_v13, %v797_v16 }
 0x4ec   :  { %v813_v51 = vmin.f32 %v805_v6, 0.0  ;;  %vm809_vm8 = vcmp.gt.f32.partialorder %v805_v6, 0.0 }
 0x4ee   :  { %v770_v15 = vpop.permute.xlu0 %769  ;;  %v817_v24 = vmul.f32 1.442695, %v813_v51 }
 0x4ef   :  { %v790_v63 = vsel %vm788_vm7, %v785_v22, %v770_v15 }
 0x4f0   :  { %v798_v30 = vmul.f32 %v1146_v11, %v790_v63  ;;  %1213 = vpow2.f32 %v817_v24 }
 0x4f2   :  { %v806_v34 = vadd.f32 %v1147_v13, %v798_v30 }
 0x4f4   :  { %v740_v26 = vpop.permute.xlu1 %739  ;;  %v814_v32 = vmin.f32 %v806_v34, 0.0  ;;  %vm810_vm9 = vcmp.gt.f32.partialorder %v806_v34, 0.0 }
 0x4f5   :  { %v781_v62 = vsel %vm195_vm3, %v262_v31, %v740_v26 }
 0x4f6   :  { %v1214_v52 = vpop.eup %1213  ;;  %v772_v2 = vpop.permute.xlu0 %771  ;;  %v786_v18 = vsel %vm783_vm6, %v781_v62, %v756_v17  ;;  %v819_v20 = vmul.f32 1.442695, %v814_v32 }
 0x4f7   :  { %v791_v29 = vsel %vm788_vm7, %v786_v18, %v772_v2  ;;  %v1105_v21 = vadd.f32 -1.0, %v1214_v52 }
 0x4f8   :  { %v799_v47 = vmul.f32 %v1146_v11, %v791_v29  ;;  %1215 = vpow2.f32 %v819_v20 }
 0x4f9   :  { %v829_v33 = vsel %vm809_vm8, %v805_v6, %v1105_v21 }
 0x4fa   :  { %v807_v42 = vadd.f32 %v1147_v13, %v799_v47  ;;  %910 = vmatmul.f32.vlgmr.msrb.gmra.mxu3 %v829_v33 }
 0x4fc   :  { %v742_v35 = vpop.permute.xlu1 %741  ;;  %v815_v59 = vmin.f32 %v807_v42, 0.0  ;;  %vm811_vm10 = vcmp.gt.f32.partialorder %v807_v42, 0.0 }
 0x4fd   :  { %v782_v40 = vsel %vm195_vm3, %v264_v28, %v742_v35 }
 0x4fe   :  { %v1216_v41 = vpop.eup %1215  ;;  %v774_v43 = vpop.permute.xlu0 %773  ;;  %v787_v50 = vsel %vm783_vm6, %v782_v40, %v758_v55  ;;  %v821_v44 = vmul.f32 1.442695, %v815_v59 }
 0x4ff   :  { %v792_v61 = vsel %vm788_vm7, %v787_v50, %v774_v43  ;;  %v1106_v10 = vadd.f32 -1.0, %v1216_v41 }
 0x500   :  { %v800_v53 = vmul.f32 %v1146_v11, %v792_v61  ;;  %1217 = vpow2.f32 %v821_v44 }
 0x501   :  { %v830_v19 = vsel %vm810_vm9, %v806_v34, %v1106_v10 }
 0x502   :  { %v808_v27 = vadd.f32 %v1147_v13, %v800_v53  ;;  %v865_v3 = vpack.c.bf16 %v830_v19, %v829_v33  ;;  %913 = vmatmul.f32.gmra.mxu3 %v830_v19 }
 0x504   :  { %883 = vmatmul.bf16.vlgmr.msrb.gmra.mxu2 %v865_v3  ;;  %v816_v56 = vmin.f32 %v808_v27, 0.0  ;;  %vm812_vm11 = vcmp.gt.f32.partialorder %v808_v27, 0.0 }
 0x506   :  { %v1218_v54 = vpop.eup %1217  ;;  %v823_v57 = vmul.f32 1.442695, %v816_v56 }
 0x507   :  { %v1107_v49 = vadd.f32 -1.0, %v1218_v54 }
 0x508   :  { %1219 = vpow2.f32 %v823_v57 }
 0x509   :  { %v831_v58 = vsel %vm811_vm10, %v807_v42, %v1107_v49 }
 0x50a   :  { %916 = vmatmul.f32.gmra.mxu3 %v831_v58 }
 0x50e   :  { %v1220_v38 = vpop.eup %1219 }
 0x50f   :  { %v1108_v45 = vadd.f32 -1.0, %v1220_v38 }
 0x511   :  { %v832_v7 = vsel %vm812_vm11, %v808_v27, %v1108_v45 }
 0x512   :  { %919 = vmatmul.f32.gmra.mxu3 %v832_v7  ;;  %v866_v4 = vpack.c.bf16 %v832_v7, %v831_v58 }
 0x514   :  { %888 = vmatmul.bf16.gmra.mxu2 %v866_v4 }
 0x57d   :  { %v911_v5 = vpop.f32.mrf.mxu3 }
 0x57e   :  { %959 = vperm.xlu1 %1143, %v911_v5  }
 0x585   :  { %v914_v25 = vpop.f32.mrf.mxu3 }
 0x586   :  { %964 = vperm.xlu2 %1144, %v914_v25  }
 0x587   :  { %v884_v9 = vpop.f32.mrf.mxu2 }
 0x58d   :  { %v917_v11 = vpop.f32.mrf.mxu3 }
 0x58e   :  { %969 = vperm.xlu0 %1145, %v917_v11  }
 0x58f   :  { %v886_v13 = vpop.f32.mrf.mxu2 }
 0x590   :  { %v923_v46 = vpack.c.bf16 %v886_v13, %v884_v9 }
 0x595   :  { %v920_v14 = vpop.f32.mrf.mxu3 }
 0x596   :  { %974 = vperm.xlu1 %1143, %v920_v14  }
 0x597   :  { %v889_v23 = vpop.f32.mrf.mxu2 }
 0x59f   :  { %v891_v39 = vpop.f32.mrf.mxu2 }
 0x5a0   :  { %v924_v36 = vpack.c.bf16 %v891_v39, %v889_v23  ;;  %v1148_v23 = vld [vmem:[%s1841_s8] ss:$0 sm:$0xff]  ;;  %s1276_s8 = smov 128  }
 0x5a2   :  { %1056 = vmatpush.bf16.msra.mxu0 %v924_v36 }
 0x5a6   :  { %1057 = vmatpush.bf16.msra.mxu0 %v923_v46 }
 0x5ac   :  { %925 = vxpose.xlu2.b32.start [1/4] (short) (narrow) %v911_v5, 8 }
 0x5b4   :  { %926 = vxpose.xlu2.b32.cont [2/4] (short) (narrow) %v914_v25, 8 }
 0x5bc   :  { %927 = vxpose.xlu2.b32.cont [3/4] (short) (narrow) %v917_v11, 8 }
 0x5c4   :  { %928 = vxpose.xlu2.b32.end [4/4] (short) (narrow) %v920_v14, 8 }
 0x5e0   :  { %v965_v16 = vpop.permute.xlu2 %964 }
 0x5f0   :  { %v960_v6 = vpop.permute.xlu1 %959 }
 0x600   :  { %v970_v51 = vpop.permute.xlu0 %969 }
 0x608   :  { %v975_v15 = vpop.permute.xlu1 %974 }
 0x645   :  { %v941_v8 = vpop.trf.xlu2 }
 0x646   :  { %v977_v37 = vperm.slane %v941_v8, 0 }
 0x648   :  { %v979_v22 = vadd.f32 %v977_v37, %v965_v16  ;;  %v978_v24 = vadd.f32 %v977_v37, %v960_v6  ;;  %v981_v63 = vadd.f32 %v977_v37, %v975_v15  ;;  %v980_v30 = vadd.f32 %v977_v37, %v970_v51 }
 0x64a   :  { %v983_v31 = vmul.f32 0.2, %v979_v22  ;;  %v982_v34 = vmul.f32 0.2, %v978_v24  ;;  %v985_v32 = vmul.f32 0.2, %v981_v63 }
 0x64b   :  { %v984_v62 = vmul.f32 0.2, %v980_v30 }
 0x64c   :  { %v987_v17 = vmax.f32 %v979_v22, %v983_v31  ;;  %v986_v26 = vmax.f32 %v978_v24, %v982_v34  ;;  %v989_v20 = vmax.f32 %v981_v63, %v985_v32 }
 0x64d   :  { %v988_v29 = vmax.f32 %v980_v30, %v984_v62 }
 0x64e   :  { %v991_v48 = vadd.f32 %v987_v17, %v1440_v0  ;;  %v990_v52 = vadd.f32 %v986_v26, %v1443_v1  ;;  %v993_v21 = vadd.f32 %v989_v20, %v1528_v12 }
 0x64f   :  { %v992_v47 = vadd.f32 %v988_v29, %v1508_v60 }
 0x650   :  { %v997_v2 = vsel %vm195_vm3, %v991_v48, -inf  ;;  %v994_v18 = vsel %vm195_vm3, %v990_v52, -inf  ;;  %v1003_v33 = vsel %vm195_vm3, %v993_v21, -inf }
 0x651   :  { %998 = vmax.xlane.f32.xlu0 %v997_v2  ;;  %995 = vmax.xlane.f32.xlu1 %v994_v18  ;;  %v1000_v42 = vsel %vm195_vm3, %v992_v47, -inf }
 0x659   :  { %1004 = vmax.xlane.f32.xlu0 %v1003_v33  ;;  %1001 = vmax.xlane.f32.xlu1 %v1000_v42 }
 0x6c4   :  { %v999_v0 = vpop.xlane.xlu0 %998  ;;  %v996_v1 = vpop.xlane.xlu1 %995 }
 0x6c5   :  { %v1007_v28 = vsub.f32 %v991_v48, %v999_v0  ;;  %v1006_v35 = vsub.f32 %v990_v52, %v996_v1 }
 0x6c7   :  { %v1012_v59 = vmul.f32 1.442695, %v1007_v28  ;;  %v1010_v55 = vmul.f32 1.442695, %v1006_v35 }
 0x6c9   :  { %1221 = vpow2.f32 %v1012_v59 }
 0x6ca   :  { %1223 = vpow2.f32 %v1010_v55 }
 0x6cc   :  { %v1005_v40 = vpop.xlane.xlu0 %1004  ;;  %v1002_v41 = vpop.xlane.xlu1 %1001 }
 0x6cd   :  { %v1009_v43 = vsub.f32 %v993_v21, %v1005_v40  ;;  %v1008_v12 = vsub.f32 %v992_v47, %v1002_v41 }
 0x6cf   :  { %v1222_v50 = vpop.eup %1221  ;;  %v1016_v60 = vmul.f32 1.442695, %v1009_v43  ;;  %v1014_v44 = vmul.f32 1.442695, %v1008_v12 }
 0x6d0   :  { %v1224_v61 = vpop.eup %1223  ;;  %v1021_v10 = vsel %vm195_vm3, %v1222_v50, 0.0 }
 0x6d1   :  { %1225 = vpow2.f32 %v1016_v60  ;;  %1022 = vadd.xlane.f32.xlu0 %v1021_v10  ;;  %v1018_v53 = vsel %vm195_vm3, %v1224_v61, 0.0 }
 0x6d2   :  { %1227 = vpow2.f32 %v1014_v44  ;;  %1019 = vadd.xlane.f32.xlu1 %v1018_v53 }
 0x6d7   :  { %v1226_v19 = vpop.eup %1225 }
 0x6d8   :  { %v1228_v27 = vpop.eup %1227  ;;  %v1027_v3 = vsel %vm195_vm3, %v1226_v19, 0.0 }
 0x6d9   :  { %1028 = vadd.xlane.f32.xlu2 %v1027_v3  ;;  %v1024_v56 = vsel %vm195_vm3, %v1228_v27, 0.0 }
 0x6da   :  { %1025 = vadd.xlane.f32.xlu1 %v1024_v56 }
 0x744   :  { %v1023_v54 = vpop.xlane.xlu0 %1022 }
 0x745   :  { %1229 = vrcp.f32 %v1023_v54  ;;  %v1020_v57 = vpop.xlane.xlu1 %1019 }
 0x746   :  { %1231 = vrcp.f32 %v1020_v57 }
 0x74b   :  { %v1230_v49 = vpop.eup %1229 }
 0x74c   :  { %v1232_v58 = vpop.eup %1231  ;;  %v1035_v38 = vmul.f32 %v1230_v49, %v1222_v50  ;;  %v1029_v7 = vpop.xlane.xlu2 %1028 }
 0x74d   :  { %v1034_v45 = vmul.f32 %v1232_v58, %v1224_v61  ;;  %v1026_v5 = vpop.xlane.xlu1 %1025  ;;  %1233 = vrcp.f32 %v1029_v7 }
 0x74e   :  { %1235 = vrcp.f32 %v1026_v5 }
 0x74f   :  { %v1038_v4 = vpack.c.bf16 %v1035_v38, %v1034_v45 }
 0x751   :  { %1109 = vmatmul.msk.bf16.vlgmr.msra.gmra.mxu0 %vm195_vm3, %v1038_v4 }
 0x753   :  { %v1234_v25 = vpop.eup %1233 }
 0x754   :  { %v1236_v9 = vpop.eup %1235  ;;  %v1037_v13 = vmul.f32 %v1234_v25, %v1226_v19 }
 0x755   :  { %v1036_v11 = vmul.f32 %v1236_v9, %v1228_v27 }
 0x757   :  { %v1039_v14 = vpack.c.bf16 %v1037_v13, %v1036_v11 }
 0x761   :  { %1110 = vmatmul.msk.bf16.gmra.mxu0 %vm195_vm3, %v1039_v14 }
 0x7ce   :  { %v1059_v39 = vpop.f32.mrf.mxu0 }
 0x7cf   :  { %v1060_v36 = vadd.f32 %v1148_v23, %v1059_v39 }
 0x7d1   :  { %1069 = vst.msk [vmem:[#allocation2] sm:$0xff] %vm195_vm3, %v1060_v36 }
 0x7d6   :  { %v1061_v46 = vpop.f32.mrf.mxu0 }
 0x7d7   :  { %v1062_v16 = vadd.f32 %v1148_v23, %v1061_v46 }
 0x7d9   :  { %1070 = vst.msk [vmem:[#allocation2 + $0x8] sm:$0xff] %vm195_vm3, %v1062_v16 }
 0x7de   :  { %v1064_v6 = vpop.f32.mrf.mxu0 }
 0x7df   :  { %v1065_v8 = vadd.f32 %v1148_v23, %v1064_v6 }
 0x7e1   :  { %1071 = vst.msk [vmem:[#allocation2 + $0x10] sm:$0xff] %vm195_vm3, %v1065_v8 }
 0x7e6   :  { %v1066_v37 = vpop.f32.mrf.mxu0 }
 0x7e7   :  { %v1067_v51 = vadd.f32 %v1148_v23, %v1066_v37 }
 0x7e9   :  { %1072 = vst.msk [vmem:[#allocation2 + $0x18] sm:$0xff] %vm195_vm3, %v1067_v51 }
 0x7ea   :  { %1085 = dma.vmem_to_hbm [thread:$0]  %s1078_s28, 512, %s1080_s10, [#allocation3], %s1276_s8, %s1276_s8, %s1277_s11  }
 0x7eb   :  { %1261 = dma.done.wait [#allocation3], 512  }
 0x7ec   :  { %1262 = vsyncadd [#allocation3], 4294966784 }
 0x7ed   :  { %1090 = vsyncpa [#allocation3], 1 }

</bundles_post_ra>
